<compile_context>
chip_gen: v6e
topology: v6e:2x2x1
jax: 0.10.0
libtpu: 0.0.40
codegen_flags: <defaults>
</compile_context>

<pallas_src>
import jax
import jax.numpy as jnp
from jax.experimental import pallas as pl
from jax.experimental.pallas import tpu as pltpu


def _round_up(x, m):
    return -(-x // m) * m


def _ctx_insert_kernel(ctx_ref, head_ref, prompts_hbm_ref, out_ref):
    """Rewrite the leading seq-window [0, W) of one class chunk.

    ctx_ref:         (n_ctx, D)       learned context, VMEM-resident (constant block index)
    head_ref:        (TC, 1+pad, D)   frozen rows of the window: SOS row + `pad` alignment
                                      rows taken from the start of token_suffix
    prompts_hbm_ref: (n_cls, L, D)    persistent prompts buffer (raw HBM ref); aliased to
                                      the output — donation vehicle only, never read here
    out_ref:         (TC, W, D)       seq-window [0, W) of this chunk, W = 1 + n_ctx + pad
    """
    del prompts_hbm_ref  # aliased persistent buffer; rows >= W keep their old values
    tc, w, d = out_ref.shape
    n_ctx = ctx_ref.shape[0]
    pad = w - 1 - n_ctx  # static

    # Frozen SOS row.
    out_ref[:, pl.ds(0, 1), :] = head_ref[:, pl.ds(0, 1), :].astype(out_ref.dtype)
    # Learned context rows: cast once at (n_ctx, D), then broadcast across the class chunk.
    ctx_b = jnp.broadcast_to(
        ctx_ref[...].astype(out_ref.dtype)[None, :, :], (tc, n_ctx, d))
    out_ref[:, pl.ds(1, n_ctx), :] = ctx_b
    # Frozen sublane-alignment rows (first `pad` suffix rows), if any.
    if pad:
        out_ref[:, pl.ds(1 + n_ctx, pad), :] = (
            head_ref[:, pl.ds(1, pad), :].astype(out_ref.dtype))


def _vmem_limit_bytes():
    """Generation-aware scoped-VMEM limit.

    ~40 MiB of v7x's 64 MiB physical VMEM (headroom for compiler-internal scratch), up to
    96 MiB of v5e/v6e's 128 MiB; explicit so v5e's 16 MiB default scoped limit never
    constrains the chunk size.  Falls back to the conservative v7x figure.
    """
    phys = 64 << 20
    try:
        phys = int(pltpu.get_tpu_info().vmem_capacity_bytes)
    except Exception:
        pass  # stay conservative if the query is unavailable
    return int(max(16 << 20, min(phys * 5 // 8, 96 << 20)))


def _pick_class_chunk(n_cls, w_rows, head_rows, d, itemsize, ctx_bytes, budget_bytes):
    """Classes per grid step.

    Accounts for the double-buffered out-window and frozen-head blocks (the head block is
    sublane-padded to a multiple of 8 rows in VMEM) plus the resident ctx block.  Returns a
    divisor of n_cls (every DMA is a full, unmasked block) and prefers an even number of
    grid steps so both v7x TensorCores get balanced work.
    """
    head_padded = _round_up(head_rows, 8)
    per_class = 2 * d * itemsize * (w_rows + head_padded)  # x2: double-buffering
    cap = (budget_bytes - ctx_bytes) // max(per_class, 1)
    cap = int(max(1, min(cap, n_cls)))
    divisors = [t for t in range(1, cap + 1) if n_cls % t == 0]
    for good_steps in (lambda s: s >= 2 and s % 2 == 0,  # even step count (megacore balance)
                       lambda s: s >= 2):                # at least 2 steps
        good = [t for t in divisors if good_steps(n_cls // t)]
        if good:
            return max(good)
    return max(divisors)


def init_prompt_buffer(token_prefix, token_suffix, n_ctx):
    """One-time init (the analogue of registering the frozen prefix/suffix buffers).

    Returns:
      prompts:     (n_cls, L, D) persistent buffer with SOS + zeros(ctx rows) + suffix.
      frozen_head: (n_cls, W - n_ctx, D) frozen rows of the sublane-aligned window [0, W)
                   that each forward rewrites: the SOS row plus the first W - 1 - n_ctx
                   suffix rows (kept only so the written window stays 8-sublane aligned).
    """
    n_cls, one, d = token_prefix.shape
    assert one == 1
    suf_len = token_suffix.shape[1]
    seq_len = 1 + n_ctx + suf_len
    dtype = token_prefix.dtype
    w = min(_round_up(1 + n_ctx, 8), seq_len)
    pad = w - 1 - n_ctx
    prompts = jnp.concatenate(
        [token_prefix, jnp.zeros((n_cls, n_ctx, d), dtype), token_suffix.astype(dtype)],
        axis=1)
    if pad:
        frozen_head = jnp.concatenate(
            [token_prefix, token_suffix[:, :pad, :].astype(dtype)], axis=1)
    else:
        frozen_head = token_prefix
    return prompts, frozen_head


def prompt_learner_forward(ctx, prompts, frozen_head, *, xla_fastpath_bytes=0):
    """One PromptLearner.forward() step ('end' position, no EMA, no batch).

    ctx:         (n_ctx, D) learned context (the nn.Parameter).
    prompts:     (n_cls, L, D) persistent buffer from init_prompt_buffer(); frozen
                 prefix/suffix rows already in place.  Call through
                 jax.jit(prompt_learner_forward, donate_argnums=(1,)) so the ctx rows are
                 updated in place (no full-prompt copy per forward).
    frozen_head: (n_cls, W - n_ctx, D) frozen rows of the rewritten window.

    Returns the fully assembled (n_cls, L, D) prompts (same buffer when donated).
    """
    assert ctx.ndim == 2, "default config: shared 2-D ctx (batch_size=None)"
    n_ctx, d = ctx.shape
    n_cls, seq_len, d2 = prompts.shape
    assert d2 == d
    out_dtype = prompts.dtype  # clip_model.dtype; ctx is cast to it (as in the module)

    w = min(_round_up(1 + n_ctx, 8), seq_len)  # sublane-aligned window height
    head_rows = w - n_ctx                      # 1 (SOS) + pad alignment rows
    assert frozen_head.shape == (n_cls, head_rows, d)

    # Tiny problems: launch + per-step overhead dominates; let XLA fuse it instead.
    if prompts.size * jnp.dtype(out_dtype).itemsize <= xla_fastpath_bytes:
        ctx_b = jnp.broadcast_to(ctx.astype(out_dtype)[None, :, :], (n_cls, n_ctx, d))
        return jax.lax.dynamic_update_slice(prompts, ctx_b, (0, 1, 0))

    vmem_limit = _vmem_limit_bytes()
    ctx_bytes = _round_up(n_ctx, 8) * d * jnp.dtype(ctx.dtype).itemsize
    tc = _pick_class_chunk(n_cls, w, head_rows, d, jnp.dtype(out_dtype).itemsize,
                           ctx_bytes, budget_bytes=(vmem_limit * 3) // 4)
    grid = (n_cls // tc,)  # tc divides n_cls -> every block DMA is full and unmasked

    return pl.pallas_call(
        _ctx_insert_kernel,
        out_shape=jax.ShapeDtypeStruct((n_cls, seq_len, d), out_dtype),
        grid=grid,
        in_specs=[
            # ctx: constant block index -> stays resident in VMEM, not re-DMA'd per step.
            pl.BlockSpec((n_ctx, d), lambda i: (0, 0)),
            # Frozen head rows of this class chunk.
            pl.BlockSpec((tc, head_rows, d), lambda i: (i, 0, 0)),
            # Persistent prompts buffer: raw HBM ref, alias target only (no auto-DMA).
            pl.BlockSpec(memory_space=pl.ANY),
        ],
        # Only the aligned window [0, W) of each class chunk is ever written back; rows >= W
        # (class-name / EOS / padding embeddings) keep their values from the aliased buffer.
        out_specs=pl.BlockSpec((tc, w, d), lambda i: (i, 0, 0)),
        input_output_aliases={2: 0},
        compiler_params=pltpu.CompilerParams(
            dimension_semantics=("parallel",),
            vmem_limit_bytes=vmem_limit,
        ),
    )(ctx, frozen_head, prompts)


if __name__ == "__main__":
    # Small, deterministic synthetic setup consistent with PromptLearner.__init__:
    #   n_cls classes, n_ctx learned context tokens, ctx_dim embedding width,
    #   token_prefix = embedding[:, :1, :], token_suffix = embedding[:, 1+n_ctx:, :].
    n_cls, n_ctx, ctx_dim, seq_len = 8, 8, 128, 24

    key = jax.random.PRNGKey(0)
    k_ctx, k_ctx2, k_emb = jax.random.split(key, 3)

    # nn.init.normal_(ctx_vectors, std=0.02); second ctx simulates a later training step.
    ctx = (0.02 * jax.random.normal(k_ctx, (n_ctx, ctx_dim))).astype(jnp.float32)
    ctx2 = (0.02 * jax.random.normal(k_ctx2, (n_ctx, ctx_dim))).astype(jnp.float32)

    # Synthetic frozen token embeddings (stand-in for clip_model.token_embedding output).
    # TODO(synk): real CLIP tokenization + token_embedding lookup has no in-script equivalent.
    embedding = jax.random.normal(k_emb, (n_cls, seq_len, ctx_dim), dtype=jnp.float32)
    token_prefix = embedding[:, :1, :]
    token_suffix = embedding[:, 1 + n_ctx:, :]

    prompts_buf, frozen_head = init_prompt_buffer(token_prefix, token_suffix, n_ctx)

    def reference(c):
        return jnp.concatenate(
            [token_prefix,
             jnp.broadcast_to(c[None, :, :], (n_cls, n_ctx, ctx_dim)),
             token_suffix],
            axis=1)

    # Donate the persistent buffer so the ctx-row update happens in place.
    forward = jax.jit(prompt_learner_forward, donate_argnums=(1,))

    p1 = jax.block_until_ready(forward(ctx, prompts_buf, frozen_head))
    assert p1.shape == (n_cls, seq_len, ctx_dim)
    assert p1.dtype == token_prefix.dtype
    assert jnp.allclose(p1, reference(ctx)), "mismatch vs reference (call 1)"

    # Second forward with a different ctx reuses the persistent buffer: stale ctx rows must
    # be overwritten while the frozen prefix/suffix rows stay untouched.
    p2 = jax.block_until_ready(forward(ctx2, p1, frozen_head))
    assert jnp.allclose(p2, reference(ctx2)), "mismatch vs reference (call 2)"

    print("KERNEL_OK")
</pallas_src>

<mosaic_0001>
module attributes {stable_mosaic.version = 11 : i64} {
  func.func @_ctx_insert_kernel(%arg0: i32, %arg1: memref<8x128xf32, #tpu.memory_space<vmem>>, %arg2: memref<4x8x128xf32, #tpu.memory_space<vmem>>, %arg3: memref<8x24x128xf32, #tpu.memory_space<any>>, %arg4: memref<4x16x128xf32, #tpu.memory_space<vmem>>) attributes {dimension_semantics = [#tpu.dimension_semantics<parallel>], iteration_bounds = array<i64: 2>, scalar_prefetch = 0 : i64, scratch_operands = 0 : i64, tpu.core_type = #tpu.core_type<tc>, window_params = [{pipeline_mode = #tpu.pipeline_mode<synchronous>, transform_indices = @transform_0, window_bounds = array<i64: 8, 128>}, {transform_indices = @transform_1, window_bounds = array<i64: 4, 8, 128>}, {}, {transform_indices = @transform_3, window_bounds = array<i64: 4, 16, 128>}]} {
    %c0 = arith.constant 0 : index
    %c0_0 = arith.constant 0 : index
    %c0_1 = arith.constant 0 : index
    %0 = vector.load %arg2[%c0, %c0_0, %c0_1] : memref<4x8x128xf32, #tpu.memory_space<vmem>>, vector<4x1x128xf32>
    %c0_2 = arith.constant 0 : index
    %c0_3 = arith.constant 0 : index
    %c0_4 = arith.constant 0 : index
    %1 = vector.load %arg4[%c0_2, %c0_3, %c0_4] : memref<4x16x128xf32, #tpu.memory_space<vmem>>, vector<4x1x128xf32>
    tpu.vector_store %arg4[%c0_2, %c0_3, %c0_4], %0 {strides = array<i32>} : memref<4x16x128xf32, #tpu.memory_space<vmem>>, vector<4x1x128xf32>,
    %c0_5 = arith.constant 0 : index
    %c0_6 = arith.constant 0 : index
    %2 = vector.load %arg1[%c0_5, %c0_6] : memref<8x128xf32, #tpu.memory_space<vmem>>, vector<8x128xf32>
    %3 = vector.shape_cast %2 : vector<8x128xf32> to vector<1x8x128xf32>
    %4 = vector.shape_cast %3 : vector<1x8x128xf32> to vector<1x8x128xf32>
    %5 = vector.broadcast %4 : vector<1x8x128xf32> to vector<4x8x128xf32>
    %c0_7 = arith.constant 0 : index
    %c1 = arith.constant 1 : index
    %c0_8 = arith.constant 0 : index
    %6 = vector.load %arg4[%c0_7, %c1, %c0_8] : memref<4x16x128xf32, #tpu.memory_space<vmem>>, vector<4x8x128xf32>
    tpu.vector_store %arg4[%c0_7, %c1, %c0_8], %5 {strides = array<i32>} : memref<4x16x128xf32, #tpu.memory_space<vmem>>, vector<4x8x128xf32>,
    %c0_9 = arith.constant 0 : index
    %c1_10 = arith.constant 1 : index
    %c0_11 = arith.constant 0 : index
    %7 = vector.load %arg2[%c0_9, %c1_10, %c0_11] : memref<4x8x128xf32, #tpu.memory_space<vmem>>, vector<4x7x128xf32>
    %c0_12 = arith.constant 0 : index
    %c9 = arith.constant 9 : index
    %c0_13 = arith.constant 0 : index
    %8 = vector.load %arg4[%c0_12, %c9, %c0_13] : memref<4x16x128xf32, #tpu.memory_space<vmem>>, vector<4x7x128xf32>
    tpu.vector_store %arg4[%c0_12, %c9, %c0_13], %7 {strides = array<i32>} : memref<4x16x128xf32, #tpu.memory_space<vmem>>, vector<4x7x128xf32>,
    return
  }
  func.func @transform_0(%arg0: i32) -> (i32, i32) {
    %c0_i32 = arith.constant 0 : i32
    %c0_i32_0 = arith.constant 0 : i32
    %c0_i32_1 = arith.constant 0 : i32
    return %c0_i32, %c0_i32_0 : i32, i32
  }
  func.func @transform_1(%arg0: i32) -> (i32, i32, i32) {
    %c0_i32 = arith.constant 0 : i32
    %c0_i32_0 = arith.constant 0 : i32
    %c0_i32_1 = arith.constant 0 : i32
    return %arg0, %c0_i32, %c0_i32_0 : i32, i32, i32
  }
  func.func @transform_3(%arg0: i32) -> (i32, i32, i32) {
    %c0_i32 = arith.constant 0 : i32
    %c0_i32_0 = arith.constant 0 : i32
    %c0_i32_1 = arith.constant 0 : i32
    return %arg0, %c0_i32, %c0_i32_0 : i32, i32, i32
  }
}

</mosaic_0001>

<bundles_post_ra>
// kernel: prompt_learner_forward.1
= control target key start
LH: loop header
LB: loop body
LE: loop exit
PB: predicated region body
PF: predicated region fallthrough
CT: control target
= control target key end

     0   :  { %8 = vsyncpa [#allocation3], 0  ;;  %s712_s0 = inlined_call_operand.hbm [shape: f32[8,128], index: 0, kind: input, shape index: {}]   ;;  %s713_s1 = inlined_call_operand.hbm [shape: f32[8,8,128], index: 1, kind: input, shape index: {}]   ;;  %s714_s2 = inlined_call_operand.hbm [shape: f32[8,24,128], index: 2, kind: input, shape index: {}, may-alias: {2,3}]   ;;  %s715_s3 = inlined_call_operand.hbm [shape: f32[8,24,128], index: 3, kind: output, shape index: {}, may-alias: {2,3}]  }
   0x1   :  { %9 = vsyncpa [#allocation6], 0 }
   0x2   :  { %11 = vsyncpa [#allocation6 + $0x1], 0 }
   0x3   :  { %12 = vsyncpa [#allocation4], 0 }
   0x4   :  { %14 = vsyncpa [#allocation4 + $0x1], 0  ;;  %s542_s12 = smov 0   ;;  %s544_s13 = smov 0  }
   0x5   :  { %s546_s14 = smov 0   ;;  %s548_s15 = smov 0  }
   0x6 LB: > { %s563_s2 = sadd.s32 4294967295, %s509_s15   ;;  %s322_s16 = sadd.s32 4294967294, %s509_s15   ;;  %s509_s15 = sphi %s548_s15, %s738_s15   ;;  %s505_s14 = sphi %s546_s14, %s737_s14   ;;  %s501_s13 = sphi %s544_s13, %s736_s13   ;;  %s497_s12 = sphi %s542_s12, %s735_s12  }
   0x7   : > { %s567_s17 = sadd.s32 1, %s509_s15   ;;  %s48_s18 = sadd.s32 1, %s505_s14 }
   0x8   : > { %s45_s19 = ssub.s32 %s509_s15, %s567_s17  ;;  %p55_p0 = scmp.ne.s32.totalorder %s505_s14, %s501_s13 }
   0x9   : > { %p46_p1 = scmp.eq.s32.totalorder %s45_s19, 0  ;;  %p56_p2 = scmp.eq.s32.totalorder %s509_s15, 0 }
   0xa   : > { %p61_p3 = scmp.ne.s32.totalorder %s501_s13, %s497_s12  ;;  %p716_p4 = scmp.eq.s32.totalorder %s563_s2, 0 }
   0xb   : > { %s579_s20 = scalar_select %p46_p1, %s505_s14, %s48_s18  }
   0xc   : > { %p581_p5 = por %p56_p2, %p55_p0  ;;  %p587_p6 = por %p716_p4, %p61_p3 }
   0xd   : > { %p85_p7 = scmp.eq.s32.totalorder %s563_s2, 1  ;;  %p91_p8 = scmp.eq.s32.totalorder %s322_s16, 1 }
   0xe   : > { %s721_s22 = scalar_select %p587_p6, 1, 0 }
   0xf   : > { %p323_p9 = scmp.ge.s32.totalorder %s509_s15, 1  ;;  %p98_p10 = scmp.lt.s32.totalorder %s509_s15, 3 }
  0x10   : > { %p594_p11 = por %p85_p7, %p55_p0  ;;  %p598_p12 = por %p91_p8, %p61_p3 }
  0x11   : > { %p602_p13 = pnand %p323_p9, %p98_p10  ;;  %s511_s26 = smov [#allocation2]  }
  0x12   : > { %s722_s23 = scalar_select %p594_p11, 1, 0 }
  0x13   : > { %s723_s24 = scalar_select %p598_p12, 1, 0 }
  0x14   : > { %s724_s25 = scalar_select %p602_p13, 1, 0 }
  0x15   : > { %p355_p2 = pneg %p602_p13  ;;  %s111_s27 = sshll.u32 %s511_s26, 4  ;;  %s112_s27 = int_to_ptr.vmem [resolvable:$true] %s111_s27 }
  0x16   : > { %p368_p4 = scmp.lt.s32.totalorder %s509_s15, 2  ;;  %p725_p0 = scmp.eq.s32.totalorder %s563_s2, 0 }
  0x17   : > { %s122_s29 = sand.u32 1, %s505_s14   ;;  %s424_s5 = scalar_lea.vmem %s112_s27, 128 }
  0x18   : > { %p612_p7 = pnand %p355_p2, %p725_p0  ;;  %p619_p3 = pnand %p368_p4, %p581_p5 }
  0x19   : > { %s326_s4 = sshll.u32 %s122_s29, 5  ;;  %p425_p9 = scmp.ne.s32.totalorder %s112_s27, %s424_s5 }
  0x1a   : > { %p415_p8 = pneg %p612_p7  ;;  %p432_p12 = scmp.lt.s32.totalorder %s112_s27, %s112_s27 }
  0x1b   : > { %p433_p11 = scmp.lt.s32.totalorder %s424_s5, %s424_s5 }
  0x1c   : > { %p427_p10 = pnand %p425_p9, %p415_p8 }
  0x1d   : > { %p434_p2 = por %p433_p11, %p432_p12 }
  0x1e   : > { %p428_p1 = pneg %p427_p10 }
  0x20   : > { %p435_p0 = pnand %p434_p2, %p428_p1 }
  0x22   : > { %438 = shalt.err (!%p435_p0)
}
  0x23   : > { %358 = dma.hbm_to_vmem [thread:$0]  (!%p612_p7), %s712_s0, 128, %s112_s27, [#allocation3]  }
  0x24   : > { %s339_s8 = sshll.u32 %s509_s15, 9  ;;  %s126_s9 = scalar_lea.vmem [#allocation5], %s326_s4 }
  0x25   : > { %s133_s10 = sshll.u32 %s126_s9, 4  ;;  %s634_s18 = scalar_lea.hbm %s713_s1, %s339_s8  ;;  %s636_s10 = int_to_ptr.vmem [resolvable:$true] %s133_s10 }
  0x26   : > { %s638_s19 = scalar_lea.sflag [#allocation6], %s122_s29  ;;  %s439_s21 = scalar_lea.hbm %s634_s18, 512 }
  0x27   : > { %p440_p4 = scmp.ne.s32.totalorder %s634_s18, %s439_s21  ;;  %p441_p5 = pneg %p619_p3 }
  0x28   : > { %s444_s28 = scalar_lea.hbm %s713_s1, 1024  ;;  %p445_p1 = scmp.lt.s32.totalorder %s634_s18, %s713_s1 }
  0x29   : > { %p442_p11 = pnand %p441_p5, %p440_p4  ;;  %p446_p7 = scmp.lt.s32.totalorder %s444_s28, %s439_s21 }
  0x2b   : > { %p443_p12 = pneg %p442_p11  ;;  %p447_p8 = por %p446_p7, %p445_p1 }
  0x2d   : > { %p448_p9 = pnand %p447_p8, %p443_p12 }
  0x2f   : > { %451 = shalt.err (!%p448_p9)
}
  0x30   : > { %s452_s29 = scalar_lea.vmem %s636_s10, 512  ;;  %s512_s6 = smov [#allocation5]  }
  0x31   : > { %p453_p10 = scmp.ne.s32.totalorder %s636_s10, %s452_s29  ;;  %s457_s7 = sshll.u32 %s512_s6, 4  ;;  %s458_s7 = int_to_ptr.vmem [resolvable:$false] %s457_s7 }
  0x32   : > { %s459_s8 = scalar_lea.vmem %s458_s7, 1024  ;;  %p460_p4 = scmp.lt.s32.totalorder %s636_s10, %s458_s7 }
  0x33   : > { %p455_p2 = pnand %p453_p10, %p441_p5  ;;  %p461_p11 = scmp.lt.s32.totalorder %s459_s8, %s452_s29 }
  0x35   : > { %p456_p0 = pneg %p455_p2  ;;  %p462_p6 = por %p461_p11, %p460_p4 }
  0x37   : > { %p463_p13 = pnand %p462_p6, %p456_p0 }
  0x39   : > { %466 = shalt.err (!%p463_p13)
}
  0x3a   : > { %s513_s9 = smov 128   ;;  %s514_s11 = smov 8  }
  0x3b   : > { %362 = dma.hbm_to_vmem [thread:$0]  (!%p619_p3), %s634_s18, 512, %s636_s10, %s638_s19, %s513_s9, %s513_s9, %s514_s11  }
  0x3c   : > { %p728_p5 = scmp.ne.s32.totalorder %s724_s25, 0 }
  0x3d   : > { %p729_p12 = scmp.eq.s32.totalorder (!%p728_p5), %s563_s2, 0 }
  0x3e   : > { %145 = sbr.rel (%p728_p5) target bundleno = 90 (0x5a), region = 28 }
  0x43   : > { %484 = dma.done.wait (%p729_p12), [#allocation3], 128   ;;  %p730_p1 = pmov %p729_p12 }
  0x44   : > { %s666_s16 = sand.u32 1, %s501_s13   ;;  %p731_p6 = scmp.ne.s32.totalorder %s721_s22, 0 }
  0x45   : > { %486 = vsyncadd (%p730_p1), [#allocation3], 4294967168  ;;  %s331_s21 = sshll.u32 %s666_s16, 5  ;;  %s152_s26 = scalar_lea.sflag [#allocation6], %s666_s16 }
  0x46   : > { %s155_s27 = scalar_lea.vmem [#allocation5], %s331_s21 }
  0x47   : > { %488 = dma.done.wait (%p731_p6), %s152_s26, 512  }
  0x48   : > { %490 = vsyncadd (%p731_p6), %s152_s26, 4294966784  ;;  %s332_s25 = sshll.u32 %s666_s16, 6  ;;  %v178_v0 = vld [vmem:[%s155_s27] sm:$0x1]  ;;  %v179_v1 = vld [vmem:[%s155_s27 + $0x8] sm:$0x1] }
  0x49   : > { %v180_v2 = vld [vmem:[%s155_s27 + $0x10] sm:$0x1]  ;;  %s175_s30 = scalar_lea.vmem [#allocation7], %s332_s25  ;;  %v181_v3 = vld [vmem:[%s155_s27 + $0x18] sm:$0x1]  ;;  %s200_s22 = scalar_lea.sflag [#allocation4], %s666_s16 }
  0x4a   : > { %182 = vst [vmem:[%s175_s30] sm:$0x1] %v178_v0  ;;  %183 = vst [vmem:[%s175_s30 + $0x10] sm:$0x1] %v179_v1  ;;  %v186_v4 = vld [vmem:[#allocation2] sm:$0xff]  ;;  %v191_v5 = vld [vmem:[%s155_s27 + $0x1] sm:$0x7f] }
  0x4b   : > { %184 = vst [vmem:[%s175_s30 + $0x20] sm:$0x1] %v180_v2  ;;  %185 = vst [vmem:[%s175_s30 + $0x30] sm:$0x1] %v181_v3  ;;  %v192_v6 = vld [vmem:[%s155_s27 + $0x9] sm:$0x7f] }
  0x4c   : > { %187 = vst [vmem:[%s175_s30 + $0x1] sm:$0xff] %v186_v4  ;;  %188 = vst [vmem:[%s175_s30 + $0x11] sm:$0xff] %v186_v4  ;;  %v193_v7 = vld [vmem:[%s155_s27 + $0x11] sm:$0x7f]  ;;  %v194_v8 = vld [vmem:[%s155_s27 + $0x19] sm:$0x7f] }
  0x4d   : > { %189 = vst [vmem:[%s175_s30 + $0x21] sm:$0xff] %v186_v4  ;;  %190 = vst [vmem:[%s175_s30 + $0x31] sm:$0xff] %v186_v4 }
  0x4e   : > { %195 = vst [vmem:[%s175_s30 + $0x9] sm:$0x7f] %v191_v5  ;;  %196 = vst [vmem:[%s175_s30 + $0x19] sm:$0x7f] %v192_v6 }
  0x4f   : > { %197 = vst [vmem:[%s175_s30 + $0x29] sm:$0x7f] %v193_v7  ;;  %198 = vst [vmem:[%s175_s30 + $0x39] sm:$0x7f] %v194_v8 }
  0x50   : > { %s340_s10 = smul.u32 1536, %s563_s2  ;;  %s224_s18 = sshll.u32 %s175_s30, 4  ;;  %s225_s18 = int_to_ptr.vmem [resolvable:$true] %s224_s18 }
  0x51   : > { %s515_s5 = smov 256   ;;  %p732_p13 = scmp.ne.s32.totalorder %s722_s23, 0 }
  0x52   : > { %s213_s4 = scalar_lea.hbm %s715_s3, %s340_s10  ;;  %s516_s29 = smov 384  }
  0x53   : > { %347 = sst [smem:[#allocation9]] (%p732_p13), %s515_s5  ;;  %s517_s6 = smov 2  }
  0x54   : > { %348 = sst [smem:[#allocation9 + $0x1]] (%p732_p13), %s516_s29  ;;  %s518_s7 = smov 128  }
  0x55   : > { %349 = sst [smem:[#allocation9 + $0x2]] (%p732_p13), %s517_s6  ;;  %s519_s2 = smov 8  }
  0x56   : > { %350 = sst [smem:[#allocation9 + $0x3]] (%p732_p13), %s518_s7  ;;  %s520_s8 = smov 131072  }
  0x57   : > { %351 = sst [smem:[#allocation9 + $0x4]] (%p732_p13), %s518_s7  ;;  %s521_s9 = smov 0  }
  0x58   : > { %352 = sst [smem:[#allocation9 + $0x5]] (%p732_p13), %s519_s2 }
  0x59   : > { %353 = dma.general (%p732_p13), %s225_s18, 1024, %s213_s4, %s200_s22, %s520_s8, [#allocation9], %s521_s9, 0  }
  0x5a PF: > { %s252_s11 = sand.u32 1, %s497_s12   ;;  %p733_p3 = scmp.ne.s32.totalorder %s723_s24, 0 }
  0x5b   : > { %p734_p7 = scmp.ge.s32.totalorder %s509_s15, 2  ;;  %s253_s16 = scalar_lea.sflag [#allocation4], %s252_s11 }
  0x5d   : > { %p364_p8 = pnand %p734_p7, %p733_p3 }
  0x5f   : > { %p365_p9 = pneg %p364_p8 }
  0x61   : > { %492 = dma.done.wait (%p365_p9), %s253_s16, 1024  }
  0x62   : > { %494 = vsyncadd (%p365_p9), %s253_s16, 4294966272  ;;  %p17_p10 = scmp.ge.s32.totalorder %s567_s17, 4   ;;  %s735_s12 = smov %s501_s13 }
  0x63   : > { %s736_s13 = smov %s505_s14  ;;  %s737_s14 = smov %s579_s20 }
  0x64   : > { %s738_s15 = smov %s567_s17  ;;  %19 = sbr.rel (!%p17_p10) target bundleno = 6 (0x6), region = 83 }
  0x69   :  { %258 = vsyncpa [#allocation3], 1 }
  0x6a   :  { %260 = vsyncpa [#allocation3 + $0x1], 1 }
  0x6b   :  { %261 = vsyncpa [#allocation6], 1 }
  0x6c   :  { %263 = vsyncpa [#allocation6 + $0x1], 1 }
  0x6d   :  { %264 = vsyncpa [#allocation4], 1 }
  0x6e   :  { %266 = vsyncpa [#allocation4 + $0x1], 1 }

</bundles_post_ra>
